<compile_context>
chip_gen: v6e
topology: v6e:2x2x1
jax: 0.10.0
libtpu: 0.0.40
codegen_flags: <defaults>
</compile_context>

<pallas_src>
import jax
import jax.numpy as jnp
from jax.experimental import pallas as pl
from jax.experimental.pallas import tpu as pltpu


def _cbam_kernel(x_ref, w1_ref, w2_ref, t_ref, cb_ref, o_ref):
    # x_ref : (1, C, H, W)  one batch element (NCHW; W on lanes, H on sublanes)
    # w1_ref: (Cr, C)       weight of Conv2d(C, C//r, 1, bias=False)
    # w2_ref: (C, Cr)       weight of Conv2d(C//r, C, 1, bias=False)
    # t_ref : (2, W, W)     Toeplitz matrices of the (1, K) spatial conv
    #                       (slab 0: mean-map taps, slab 1: max-map taps)
    # cb_ref: (1, 1)        spatial conv bias
    # o_ref : (1, C, H, W)
    x = x_ref[0].astype(jnp.float32)                        # (C, H, W)
    c, h, w = x.shape

    # ---- channel attention: sigmoid(fc(avg_pool(x)) + fc(max_pool(x))) ----
    sum_w = jnp.sum(x, axis=2, keepdims=True)               # (C, H, 1) lane reduce
    sum_hw = jnp.sum(sum_w, axis=1, keepdims=True)          # (C, 1, 1) sublane reduce
    avg_c = jnp.reshape(sum_hw, (c, 1)) * (1.0 / (h * w))   # (C, 1)
    max_w = jnp.max(x, axis=2, keepdims=True)               # (C, H, 1)
    max_hw = jnp.max(max_w, axis=1, keepdims=True)          # (C, 1, 1)
    max_c = jnp.reshape(max_hw, (c, 1))                     # (C, 1)

    w1 = w1_ref[...]                                        # (Cr, C)
    w2 = w2_ref[...]                                        # (C, Cr)

    def mlp(v):                                             # shared bias-free MLP
        hid = jnp.maximum(
            jnp.dot(w1, v, preferred_element_type=jnp.float32), 0.0)    # (Cr, 1)
        return jnp.dot(w2, hid, preferred_element_type=jnp.float32)     # (C, 1)

    ca = jax.nn.sigmoid(mlp(avg_c) + mlp(max_c))            # (C, 1)
    x_ca = x * jnp.reshape(ca, (c, 1, 1))                   # (C, H, W)

    # ---- spatial attention: sigmoid(conv_{1xK}(cat[mean_ch(x), max_ch(x)])) ----
    mean_ch = jnp.mean(x_ca, axis=0)                        # (H, W) slab reduce
    max_ch = jnp.max(x_ca, axis=0)                          # (H, W)
    logits = (jnp.dot(mean_ch, t_ref[0], preferred_element_type=jnp.float32)
              + jnp.dot(max_ch, t_ref[1], preferred_element_type=jnp.float32)
              + cb_ref[...])                                # (H, W)
    sa = jax.nn.sigmoid(logits)                             # (H, W)

    o_ref[0] = (x_ca * sa).astype(o_ref.dtype)


def cbam_pallas(x, fc1_w, fc2_w, conv_w, conv_b):
    """CBAM forward.

    x      : (B, C, H, W) float32
    fc1_w  : (C // r, C)   weight of Conv2d(C, C//r, 1, bias=False)
    fc2_w  : (C, C // r)   weight of Conv2d(C//r, C, 1, bias=False)
    conv_w : (1, 2, 1, K)  weight of Conv2d(2, 1, (1, K), padding=(0, K//2))
    conv_b : (1,)          bias of that conv
    """
    b, c, h, w = x.shape
    cr = fc1_w.shape[0]
    k = conv_w.shape[-1]
    pad = k // 2

    # Pre-lower the (1, K) conv along W into W x W Toeplitz matrices so the
    # kernel only does MXU matmuls.  T[i, j] = tap[i - j + pad] when the tap
    # index is in range; the conv's zero padding is realized by zero entries.
    # TODO(synk): for very large W a tap-unrolled shift formulation would avoid
    #             the O(W^2) operand; at typical CBAM widths this is cheap.
    i_idx = jnp.arange(w)[:, None]
    j_idx = jnp.arange(w)[None, :]
    k_idx = i_idx - j_idx + pad
    valid = (k_idx >= 0) & (k_idx < k)
    k_clip = jnp.clip(k_idx, 0, k - 1)
    taps_mean = conv_w[0, 0, 0, :].astype(jnp.float32)
    taps_max = conv_w[0, 1, 0, :].astype(jnp.float32)
    t_conv = jnp.stack(
        [jnp.where(valid, taps_mean[k_clip], 0.0),
         jnp.where(valid, taps_max[k_clip], 0.0)], axis=0)          # (2, W, W)
    cb = conv_b.reshape(1, 1).astype(jnp.float32)

    return pl.pallas_call(
        _cbam_kernel,
        out_shape=jax.ShapeDtypeStruct((b, c, h, w), x.dtype),
        grid=(b,),
        in_specs=[
            pl.BlockSpec((1, c, h, w), lambda i: (i, 0, 0, 0)),     # x
            pl.BlockSpec((cr, c), lambda i: (0, 0)),                # fc1 weight
            pl.BlockSpec((c, cr), lambda i: (0, 0)),                # fc2 weight
            pl.BlockSpec((2, w, w), lambda i: (0, 0, 0)),           # conv Toeplitz
            pl.BlockSpec((1, 1), lambda i: (0, 0)),                 # conv bias
        ],
        out_specs=pl.BlockSpec((1, c, h, w), lambda i: (i, 0, 0, 0)),
        compiler_params=pltpu.CompilerParams(
            dimension_semantics=("parallel",)),
    )(x, fc1_w.astype(jnp.float32), fc2_w.astype(jnp.float32), t_conv, cb)


def cbam_reference(x, fc1_w, fc2_w, conv_w, conv_b):
    """Pure-JAX mirror of the PyTorch CBAM forward."""
    b, c, h, w = x.shape
    k = conv_w.shape[-1]
    pad = k // 2

    avg = jnp.mean(x, axis=(2, 3))                       # (B, C)
    mx = jnp.max(x, axis=(2, 3))                         # (B, C)

    def fc(v):                                           # (B, C) -> (B, C)
        return jnp.maximum(v @ fc1_w.T, 0.0) @ fc2_w.T

    ca = jax.nn.sigmoid(fc(avg) + fc(mx))                # (B, C)
    x_ca = x * ca[:, :, None, None]

    mean_ch = jnp.mean(x_ca, axis=1, keepdims=True)      # (B, 1, H, W)
    max_ch = jnp.max(x_ca, axis=1, keepdims=True)        # (B, 1, H, W)
    spat = jnp.concatenate([mean_ch, max_ch], axis=1)    # (B, 2, H, W)
    spat_p = jnp.pad(spat, ((0, 0), (0, 0), (0, 0), (pad, pad)))
    logits = conv_b.reshape(1, 1, 1, 1) + sum(
        conv_w[0, 0, 0, t] * spat_p[:, 0:1, :, t:t + w]
        + conv_w[0, 1, 0, t] * spat_p[:, 1:2, :, t:t + w]
        for t in range(k))
    sa = jax.nn.sigmoid(logits)                          # (B, 1, H, W)
    return x_ca * sa


if __name__ == "__main__":
    batch, in_channels, reduction_rate, kernel_size = 2, 16, 4, 3
    height, width = 8, 128          # W on lanes -> lane-dense blocks/stores

    key = jax.random.PRNGKey(0)
    kx, k1, k2, kcw, kcb = jax.random.split(key, 5)

    x = jax.random.normal(kx, (batch, in_channels, height, width),
                          dtype=jnp.float32)

    cr = in_channels // reduction_rate
    # Parameter init mirroring PyTorch defaults (uniform +-1/sqrt(fan_in)).
    b1 = 1.0 / in_channels ** 0.5
    fc1_w = jax.random.uniform(k1, (cr, in_channels), minval=-b1, maxval=b1,
                               dtype=jnp.float32)
    b2 = 1.0 / cr ** 0.5
    fc2_w = jax.random.uniform(k2, (in_channels, cr), minval=-b2, maxval=b2,
                               dtype=jnp.float32)
    bc = 1.0 / (2 * kernel_size) ** 0.5
    conv_w = jax.random.uniform(kcw, (1, 2, 1, kernel_size), minval=-bc,
                                maxval=bc, dtype=jnp.float32)
    conv_b = jax.random.uniform(kcb, (1,), minval=-bc, maxval=bc,
                                dtype=jnp.float32)

    run = jax.jit(cbam_pallas)
    out = jax.block_until_ready(run(x, fc1_w, fc2_w, conv_w, conv_b))

    ref = cbam_reference(x, fc1_w, fc2_w, conv_w, conv_b)
    assert out.shape == x.shape
    assert jnp.allclose(out, ref, rtol=1e-4, atol=1e-5), \
        f"max abs err {jnp.max(jnp.abs(out - ref))}"

    print("KERNEL_OK")
</pallas_src>

<mosaic_0001>
module attributes {stable_mosaic.version = 11 : i64} {
  func.func @_cbam_kernel(%arg0: i32, %arg1: memref<1x16x8x128xf32, #tpu.memory_space<vmem>>, %arg2: memref<4x16xf32, #tpu.memory_space<vmem>>, %arg3: memref<16x4xf32, #tpu.memory_space<vmem>>, %arg4: memref<2x128x128xf32, #tpu.memory_space<vmem>>, %arg5: memref<1x1xf32, #tpu.memory_space<vmem>>, %arg6: memref<1x16x8x128xf32, #tpu.memory_space<vmem>>) attributes {dimension_semantics = [#tpu.dimension_semantics<parallel>], iteration_bounds = array<i64: 2>, scalar_prefetch = 0 : i64, scratch_operands = 0 : i64, tpu.core_type = #tpu.core_type<tc>, window_params = [{transform_indices = @transform_0, window_bounds = array<i64: 1, 16, 8, 128>}, {pipeline_mode = #tpu.pipeline_mode<synchronous>, transform_indices = @transform_1, window_bounds = array<i64: 4, 16>}, {pipeline_mode = #tpu.pipeline_mode<synchronous>, transform_indices = @transform_2, window_bounds = array<i64: 16, 4>}, {pipeline_mode = #tpu.pipeline_mode<synchronous>, transform_indices = @transform_3, window_bounds = array<i64: 2, 128, 128>}, {pipeline_mode = #tpu.pipeline_mode<synchronous>, transform_indices = @transform_4, window_bounds = array<i64: 1, 1>}, {transform_indices = @transform_5, window_bounds = array<i64: 1, 16, 8, 128>}]} {
    %c0 = arith.constant 0 : index
    %c0_0 = arith.constant 0 : index
    %c0_1 = arith.constant 0 : index
    %c0_2 = arith.constant 0 : index
    %0 = vector.load %arg1[%c0, %c0_0, %c0_1, %c0_2] : memref<1x16x8x128xf32, #tpu.memory_space<vmem>>, vector<1x16x8x128xf32>
    %1 = vector.shape_cast %0 : vector<1x16x8x128xf32> to vector<16x8x128xf32>
    %cst = arith.constant dense<0.000000e+00> : vector<16x8xf32>
    %2 = vector.multi_reduction <add>, %1, %cst [2] : vector<16x8x128xf32> to vector<16x8xf32>
    %3 = vector.shape_cast %2 : vector<16x8xf32> to vector<16x8x1xf32>
    %cst_3 = arith.constant dense<0.000000e+00> : vector<16x1xf32>
    %4 = vector.multi_reduction <add>, %3, %cst_3 [1] : vector<16x8x1xf32> to vector<16x1xf32>
    %5 = vector.shape_cast %4 : vector<16x1xf32> to vector<16x1x1xf32>
    %6 = vector.shape_cast %5 : vector<16x1x1xf32> to vector<16x1xf32>
    %cst_4 = arith.constant 9.765625E-4 : f32
    %7 = vector.broadcast %cst_4 : f32 to vector<16x1xf32>
    %8 = arith.mulf %6, %7 : vector<16x1xf32>
    %cst_5 = arith.constant dense<0xFF800000> : vector<16x8xf32>
    %9 = vector.multi_reduction <maximumf>, %1, %cst_5 [2] : vector<16x8x128xf32> to vector<16x8xf32>
    %10 = vector.shape_cast %9 : vector<16x8xf32> to vector<16x8x1xf32>
    %cst_6 = arith.constant dense<0xFF800000> : vector<16x1xf32>
    %11 = vector.multi_reduction <maximumf>, %10, %cst_6 [1] : vector<16x8x1xf32> to vector<16x1xf32>
    %12 = vector.shape_cast %11 : vector<16x1xf32> to vector<16x1x1xf32>
    %13 = vector.shape_cast %12 : vector<16x1x1xf32> to vector<16x1xf32>
    %c0_7 = arith.constant 0 : index
    %c0_8 = arith.constant 0 : index
    %14 = vector.load %arg2[%c0_7, %c0_8] : memref<4x16xf32, #tpu.memory_space<vmem>>, vector<4x16xf32>
    %c0_9 = arith.constant 0 : index
    %c0_10 = arith.constant 0 : index
    %15 = vector.load %arg3[%c0_9, %c0_10] : memref<16x4xf32, #tpu.memory_space<vmem>>, vector<16x4xf32>
    %cst_11 = arith.constant dense<0.000000e+00> : vector<4x1xf32>
    %16 = tpu.matmul %14, %8, %cst_11 {dimension_numbers = #tpu.dot_dimension_numbers<[1], [0], [0], [1], [0, 0, 1, 1], [], []>} : vector<4x16xf32>, vector<16x1xf32>, vector<4x1xf32> -> vector<4x1xf32>
    %cst_12 = arith.constant 0.000000e+00 : f32
    %17 = vector.broadcast %cst_12 : f32 to vector<4x1xf32>
    %18 = arith.maximumf %16, %17 : vector<4x1xf32>
    %cst_13 = arith.constant dense<0.000000e+00> : vector<16x1xf32>
    %19 = tpu.matmul %15, %18, %cst_13 {dimension_numbers = #tpu.dot_dimension_numbers<[1], [0], [0], [1], [0, 0, 1, 1], [], []>} : vector<16x4xf32>, vector<4x1xf32>, vector<16x1xf32> -> vector<16x1xf32>
    %cst_14 = arith.constant dense<0.000000e+00> : vector<4x1xf32>
    %20 = tpu.matmul %14, %13, %cst_14 {dimension_numbers = #tpu.dot_dimension_numbers<[1], [0], [0], [1], [0, 0, 1, 1], [], []>} : vector<4x16xf32>, vector<16x1xf32>, vector<4x1xf32> -> vector<4x1xf32>
    %cst_15 = arith.constant 0.000000e+00 : f32
    %21 = vector.broadcast %cst_15 : f32 to vector<4x1xf32>
    %22 = arith.maximumf %20, %21 : vector<4x1xf32>
    %cst_16 = arith.constant dense<0.000000e+00> : vector<16x1xf32>
    %23 = tpu.matmul %15, %22, %cst_16 {dimension_numbers = #tpu.dot_dimension_numbers<[1], [0], [0], [1], [0, 0, 1, 1], [], []>} : vector<16x4xf32>, vector<4x1xf32>, vector<16x1xf32> -> vector<16x1xf32>
    %24 = arith.addf %19, %23 : vector<16x1xf32>
    %25 = arith.negf %24 : vector<16x1xf32>
    %26 = math.exp %25 : vector<16x1xf32>
    %cst_17 = arith.constant 1.000000e+00 : f32
    %27 = vector.broadcast %cst_17 : f32 to vector<16x1xf32>
    %28 = arith.addf %27, %26 : vector<16x1xf32>
    %29 = arith.divf %27, %28 : vector<16x1xf32>
    %30 = vector.shape_cast %29 : vector<16x1xf32> to vector<16x1x1xf32>
    %31 = vector.broadcast %30 : vector<16x1x1xf32> to vector<16x8x128xf32>
    %32 = arith.mulf %1, %31 : vector<16x8x128xf32>
    %cst_18 = arith.constant dense<0.000000e+00> : vector<8x128xf32>
    %33 = vector.multi_reduction <add>, %32, %cst_18 [0] : vector<16x8x128xf32> to vector<8x128xf32>
    %cst_19 = arith.constant 1.600000e+01 : f32
    %34 = vector.broadcast %cst_19 : f32 to vector<8x128xf32>
    %35 = arith.divf %33, %34 : vector<8x128xf32>
    %cst_20 = arith.constant dense<0xFF800000> : vector<8x128xf32>
    %36 = vector.multi_reduction <maximumf>, %32, %cst_20 [0] : vector<16x8x128xf32> to vector<8x128xf32>
    %c0_21 = arith.constant 0 : index
    %c0_22 = arith.constant 0 : index
    %c0_23 = arith.constant 0 : index
    %37 = vector.load %arg4[%c0_21, %c0_22, %c0_23] : memref<2x128x128xf32, #tpu.memory_space<vmem>>, vector<1x128x128xf32>
    %38 = vector.shape_cast %37 : vector<1x128x128xf32> to vector<128x128xf32>
    %cst_24 = arith.constant dense<0.000000e+00> : vector<8x128xf32>
    %39 = tpu.matmul %35, %38, %cst_24 {dimension_numbers = #tpu.dot_dimension_numbers<[1], [0], [0], [1], [0, 0, 1, 1], [], []>} : vector<8x128xf32>, vector<128x128xf32>, vector<8x128xf32> -> vector<8x128xf32>
    %c1 = arith.constant 1 : index
    %c0_25 = arith.constant 0 : index
    %c0_26 = arith.constant 0 : index
    %40 = vector.load %arg4[%c1, %c0_25, %c0_26] : memref<2x128x128xf32, #tpu.memory_space<vmem>>, vector<1x128x128xf32>
    %41 = vector.shape_cast %40 : vector<1x128x128xf32> to vector<128x128xf32>
    %cst_27 = arith.constant dense<0.000000e+00> : vector<8x128xf32>
    %42 = tpu.matmul %36, %41, %cst_27 {dimension_numbers = #tpu.dot_dimension_numbers<[1], [0], [0], [1], [0, 0, 1, 1], [], []>} : vector<8x128xf32>, vector<128x128xf32>, vector<8x128xf32> -> vector<8x128xf32>
    %43 = arith.addf %39, %42 : vector<8x128xf32>
    %c0_28 = arith.constant 0 : index
    %c0_29 = arith.constant 0 : index
    %44 = vector.load %arg5[%c0_28, %c0_29] : memref<1x1xf32, #tpu.memory_space<vmem>>, vector<1x1xf32>
    %45 = vector.broadcast %44 : vector<1x1xf32> to vector<8x128xf32>
    %46 = arith.addf %43, %45 : vector<8x128xf32>
    %47 = arith.negf %46 : vector<8x128xf32>
    %48 = math.exp %47 : vector<8x128xf32>
    %cst_30 = arith.constant 1.000000e+00 : f32
    %49 = vector.broadcast %cst_30 : f32 to vector<8x128xf32>
    %50 = arith.addf %49, %48 : vector<8x128xf32>
    %51 = arith.divf %49, %50 : vector<8x128xf32>
    %52 = vector.shape_cast %51 : vector<8x128xf32> to vector<1x8x128xf32>
    %53 = vector.broadcast %52 : vector<1x8x128xf32> to vector<16x8x128xf32>
    %54 = arith.mulf %32, %53 : vector<16x8x128xf32>
    %c0_31 = arith.constant 0 : index
    %c0_32 = arith.constant 0 : index
    %c0_33 = arith.constant 0 : index
    %c0_34 = arith.constant 0 : index
    %55 = vector.load %arg6[%c0_31, %c0_32, %c0_33, %c0_34] : memref<1x16x8x128xf32, #tpu.memory_space<vmem>>, vector<1x16x8x128xf32>
    %56 = vector.shape_cast %55 : vector<1x16x8x128xf32> to vector<16x8x128xf32>
    %57 = vector.shape_cast %54 : vector<16x8x128xf32> to vector<1x16x8x128xf32>
    tpu.vector_store %arg6[%c0_31, %c0_32, %c0_33, %c0_34], %57 {strides = array<i32>} : memref<1x16x8x128xf32, #tpu.memory_space<vmem>>, vector<1x16x8x128xf32>,
    return
  }
  func.func @transform_0(%arg0: i32) -> (i32, i32, i32, i32) {
    %c0_i32 = arith.constant 0 : i32
    %c0_i32_0 = arith.constant 0 : i32
    %c0_i32_1 = arith.constant 0 : i32
    %c0_i32_2 = arith.constant 0 : i32
    return %arg0, %c0_i32, %c0_i32_0, %c0_i32_1 : i32, i32, i32, i32
  }
  func.func @transform_1(%arg0: i32) -> (i32, i32) {
    %c0_i32 = arith.constant 0 : i32
    %c0_i32_0 = arith.constant 0 : i32
    %c0_i32_1 = arith.constant 0 : i32
    return %c0_i32, %c0_i32_0 : i32, i32
  }
  func.func @transform_2(%arg0: i32) -> (i32, i32) {
    %c0_i32 = arith.constant 0 : i32
    %c0_i32_0 = arith.constant 0 : i32
    %c0_i32_1 = arith.constant 0 : i32
    return %c0_i32, %c0_i32_0 : i32, i32
  }
  func.func @transform_3(%arg0: i32) -> (i32, i32, i32) {
    %c0_i32 = arith.constant 0 : i32
    %c0_i32_0 = arith.constant 0 : i32
    %c0_i32_1 = arith.constant 0 : i32
    %c0_i32_2 = arith.constant 0 : i32
    return %c0_i32, %c0_i32_0, %c0_i32_1 : i32, i32, i32
  }
  func.func @transform_4(%arg0: i32) -> (i32, i32) {
    %c0_i32 = arith.constant 0 : i32
    %c0_i32_0 = arith.constant 0 : i32
    %c0_i32_1 = arith.constant 0 : i32
    return %c0_i32, %c0_i32_0 : i32, i32
  }
  func.func @transform_5(%arg0: i32) -> (i32, i32, i32, i32) {
    %c0_i32 = arith.constant 0 : i32
    %c0_i32_0 = arith.constant 0 : i32
    %c0_i32_1 = arith.constant 0 : i32
    %c0_i32_2 = arith.constant 0 : i32
    return %arg0, %c0_i32, %c0_i32_0, %c0_i32_1 : i32, i32, i32, i32
  }
}

</mosaic_0001>

<bundles_post_ra>
// kernel: cbam_pallas.1
= control target key start
LH: loop header
LB: loop body
LE: loop exit
PB: predicated region body
PF: predicated region fallthrough
CT: control target
= control target key end

     0   :  { %s2300_s0 = inlined_call_operand.vmem [shape: f32[2,16,8,128], index: 0, kind: input, shape index: {}]   ;;  %s2301_s1 = inlined_call_operand.vmem [shape: f32[4,16], index: 1, kind: input, shape index: {}]   ;;  %s2302_s2 = inlined_call_operand.vmem [shape: f32[16,4], index: 2, kind: input, shape index: {}]   ;;  %s2303_s3 = inlined_call_operand.vmem [shape: f32[2,128,128], index: 3, kind: input, shape index: {}]   ;;  %s2304_s4 = inlined_call_operand.<no memory space> [shape: f32[1,1], index: 4, kind: input, shape index: {}]   ;;  %s2305_s5 = inlined_call_operand.hbm [shape: f32[2,16,8,128], index: 5, kind: output, shape index: {}]  }
   0x1   :  { %v10_v0 = vstv %s2304_s4 }
   0x2   :  { %11 = vst [vmem:[#allocation2] sm:$0x1] %v10_v0 }
   0x3   :  { %12 = vsyncpa [#allocation4], 0 }
   0x4   :  { %14 = vsyncpa [#allocation4 + $0x1], 0  ;;  %s1842_s20 = smov 0   ;;  %s1844_s21 = smov 0  }
   0x5   :  { %s1846_s22 = smov 0   ;;  %s1848_s23 = smov 0  }
   0x6 LB: > { %s1863_s4 = sadd.s32 4294967295, %s1800_s23   ;;  %s1483_s24 = sadd.s32 4294967294, %s1800_s23   ;;  %s1800_s23 = sphi %s1848_s23, %s2311_s23   ;;  %s1796_s22 = sphi %s1846_s22, %s2310_s22   ;;  %s1792_s21 = sphi %s1844_s21, %s2309_s21   ;;  %s1788_s20 = sphi %s1842_s20, %s2308_s20  }
   0x7   : > { %s1867_s25 = sadd.s32 1, %s1800_s23   ;;  %s137_s26 = sadd.s32 1, %s1796_s22 }
   0x8   : > { %s134_s27 = ssub.s32 %s1800_s23, %s1867_s25  ;;  %p147_p0 = scmp.ne.s32.totalorder %s1796_s22, %s1792_s21 }
   0x9   : > { %p135_p1 = scmp.eq.s32.totalorder %s134_s27, 0  ;;  %p148_p2 = scmp.eq.s32.totalorder %s1863_s4, 1 }
   0xa   : > { %p153_p3 = scmp.ne.s32.totalorder %s1792_s21, %s1788_s20  ;;  %p154_p4 = scmp.eq.s32.totalorder %s1483_s24, 1 }
   0xb   : > { %s1878_s28 = scalar_select %p135_p1, %s1796_s22, %s137_s26  }
   0xc   : > { %p1880_p5 = por %p148_p2, %p147_p0  ;;  %p1884_p6 = por %p154_p4, %p153_p3 }
   0xd   : > { %p1486_p7 = scmp.ge.s32.totalorder %s1800_s23, 1  ;;  %p192_p8 = scmp.lt.s32.totalorder %s1800_s23, 3 }
   0xf   : > { %p193_p9 = pnand %p1486_p7, %p192_p8 }
  0x10   : > { %p220_p10 = scmp.lt.s32.totalorder (!%p193_p9), %s1863_s4, 1  ;;  %s1524_s18 = sshll.u32 (!%p193_p9), %s1863_s4, 11 }
  0x11   : > { %196 = sbr.rel (%p193_p9) target bundleno = 1099 (0x44b), region = 40  ;;  %s2241_s27 = scalar_lea.hbm (!%p193_p9), %s2305_s5, %s1524_s18 }
  0x12   : > { %s1806_s8 = smov (!%p193_p9), [#allocation3]  }
  0x13   : > { %s1744_s9 = sshll.u32 (!%p193_p9), %s1806_s8, 4  ;;  %s1745_s9 = int_to_ptr.vmem [resolvable:$false] %s1744_s9 }
  0x14   : > { %s1746_s11 = scalar_lea.vmem (!%p193_p9), %s1745_s9, 4096 }
  0x16   : > { %s221_s6 = scalar_select %p220_p10, %s1863_s4, 1  ;;  %v1802_v17 = vmov 0.0   ;;  %vm1803_vm0 = vmmov 0   ;;  %vm532_vm1 = vcmask 1041409   ;;  %vm534_vm2 = vcmask 1042434  }
  0x17   : > { %1571 = vmatprep.subr.mxu0 %v1802_v17  ;;  %1578 = vmatprep.subr.mxu1 %v1802_v17  ;;  %vm536_vm3 = vcmask 1043459   ;;  %vm538_vm4 = vcmask 1044484   ;;  %vm540_vm5 = vcmask 1045509   ;;  %vm542_vm6 = vcmask 1046534  }
  0x18   : > { %s1523_s7 = sshll.u32 %s221_s6, 7  ;;  %1575 = vmatprep.mubr.msk.f32.mxu0 %vm1803_vm0, %v1802_v17  ;;  %1582 = vmatprep.mubr.msk.f32.mxu1 %vm1803_vm0, %v1802_v17  ;;  %vm544_vm7 = vcmask 1047559   ;;  %vm555_vm8 = vcmask 130048   ;;  %vm733_vm9 = vcmask 31744   ;;  %vm740_vm10 = vcmask 1043456  }
  0x19   : > { %s1895_s10 = scalar_lea.vmem %s2300_s0, %s1523_s7 }
  0x1a   : > { %v235_v1 = vld [vmem:[%s1895_s10 + $0x50] sm:$0xff]  ;;  %v233_v2 = vld [vmem:[%s1895_s10 + $0x40] sm:$0xff]  ;;  %v234_v3 = vld [vmem:[%s1895_s10 + $0x48] sm:$0xff] }
  0x1b   : > { %261 = vadd.xlane.f32.xlu1 %v235_v1  ;;  %257 = vadd.xlane.f32.xlu0 %v233_v2  ;;  %v225_v4 = vld [vmem:[%s1895_s10] sm:$0xff]  ;;  %v226_v5 = vld [vmem:[%s1895_s10 + $0x8] sm:$0xff]  ;;  %v236_v6 = vld [vmem:[%s1895_s10 + $0x58] sm:$0xff] }
  0x1c   : > { %v227_v7 = vld [vmem:[%s1895_s10 + $0x10] sm:$0xff]  ;;  %v237_v8 = vld [vmem:[%s1895_s10 + $0x60] sm:$0xff]  ;;  %v228_v9 = vld [vmem:[%s1895_s10 + $0x18] sm:$0xff] }
  0x1d   : > { %v238_v10 = vld [vmem:[%s1895_s10 + $0x68] sm:$0xff]  ;;  %v229_v11 = vld [vmem:[%s1895_s10 + $0x20] sm:$0xff]  ;;  %v239_v12 = vld [vmem:[%s1895_s10 + $0x70] sm:$0xff] }
  0x1e   : > { %v230_v13 = vld [vmem:[%s1895_s10 + $0x28] sm:$0xff]  ;;  %v240_v14 = vld [vmem:[%s1895_s10 + $0x78] sm:$0xff]  ;;  %v231_v15 = vld [vmem:[%s1895_s10 + $0x30] sm:$0xff] }
  0x1f   : > { %259 = vadd.xlane.f32.xlu0 %v234_v3  ;;  %241 = vadd.xlane.f32.xlu1 %v225_v4  ;;  %v232_v16 = vld [vmem:[%s1895_s10 + $0x38] sm:$0xff] }
  0x23   : > { %243 = vadd.xlane.f32.xlu0 %v226_v5  ;;  %263 = vadd.xlane.f32.xlu1 %v236_v6 }
  0x27   : > { %401 = vmax.xlane.f32.xlu0 %v233_v2  ;;  %403 = vmax.xlane.f32.xlu1 %v234_v3 }
  0x2b   : > { %245 = vadd.xlane.f32.xlu0 %v227_v7  ;;  %265 = vadd.xlane.f32.xlu1 %v237_v8 }
  0x2f   : > { %405 = vmax.xlane.f32.xlu0 %v235_v1  ;;  %247 = vadd.xlane.f32.xlu1 %v228_v9 }
  0x33   : > { %267 = vadd.xlane.f32.xlu0 %v238_v10  ;;  %385 = vmax.xlane.f32.xlu1 %v225_v4 }
  0x37   : > { %387 = vmax.xlane.f32.xlu0 %v226_v5  ;;  %407 = vmax.xlane.f32.xlu1 %v236_v6 }
  0x3b   : > { %249 = vadd.xlane.f32.xlu0 %v229_v11  ;;  %269 = vadd.xlane.f32.xlu1 %v239_v12 }
  0x3f   : > { %389 = vmax.xlane.f32.xlu0 %v227_v7  ;;  %409 = vmax.xlane.f32.xlu1 %v237_v8 }
  0x43   : > { %251 = vadd.xlane.f32.xlu0 %v230_v13  ;;  %271 = vadd.xlane.f32.xlu1 %v240_v14 }
  0x47   : > { %391 = vmax.xlane.f32.xlu0 %v228_v9  ;;  %411 = vmax.xlane.f32.xlu1 %v238_v10 }
  0x4b   : > { %253 = vadd.xlane.f32.xlu0 %v231_v15  ;;  %393 = vmax.xlane.f32.xlu1 %v229_v11 }
  0x4f   : > { %413 = vmax.xlane.f32.xlu0 %v239_v12  ;;  %255 = vadd.xlane.f32.xlu1 %v232_v16 }
  0x53   : > { %395 = vmax.xlane.f32.xlu0 %v230_v13  ;;  %415 = vmax.xlane.f32.xlu1 %v240_v14 }
  0x57   : > { %397 = vmax.xlane.f32.xlu0 %v231_v15  ;;  %399 = vmax.xlane.f32.xlu1 %v232_v16 }
  0xa4   : > { %v262_v18 = vpop.xlane.xlu1 %261  ;;  %v258_v19 = vpop.xlane.xlu0 %257 }
  0xa5   : > { %v333_v20 = vrot.slane %v262_v18, 4  ;;  %v321_v21 = vrot.slane %v258_v19, 4 }
  0xa7   : > { %v334_v24 = vadd.f32 %v333_v20, %v262_v18  ;;  %v322_v28 = vadd.f32 %v321_v21, %v258_v19 }
  0xa8   : > { %v260_v22 = vpop.xlane.xlu0 %259  ;;  %v242_v23 = vpop.xlane.xlu1 %241 }
  0xa9   : > { %v327_v25 = vrot.slane %v260_v22, 4  ;;  %v273_v26 = vrot.slane %v242_v23, 4  ;;  %v335_v31 = vrot.slane %v334_v24, 2  ;;  %v323_v36 = vrot.slane %v322_v28, 2 }
  0xab   : > { %v328_v27 = vadd.f32 %v327_v25, %v260_v22  ;;  %v274_v33 = vadd.f32 %v273_v26, %v242_v23  ;;  %v336_v41 = vadd.f32 %v335_v31, %v334_v24  ;;  %v324_v47 = vadd.f32 %v323_v36, %v322_v28 }
  0xac   : > { %v244_v29 = vpop.xlane.xlu0 %243  ;;  %v264_v30 = vpop.xlane.xlu1 %263 }
  0xad   : > { %v329_v32 = vrot.slane %v328_v27, 2  ;;  %v279_v34 = vrot.slane %v244_v29, 4  ;;  %v339_v35 = vrot.slane %v264_v30, 4  ;;  %v275_v43 = vrot.slane %v274_v33, 2 }
  0xae   : > { %v337_v54 = vrot.slane %v336_v41, 1  ;;  %v325_v61 = vrot.slane %v324_v47, 1 }
  0xaf   : > { %v280_v37 = vadd.f32 %v279_v34, %v244_v29  ;;  %v340_v38 = vadd.f32 %v339_v35, %v264_v30  ;;  %v330_v42 = vadd.f32 %v329_v32, %v328_v27  ;;  %v276_v56 = vadd.f32 %v275_v43, %v274_v33 }
  0xb0   : > { %v402_v39 = vpop.xlane.xlu0 %401  ;;  %v404_v40 = vpop.xlane.xlu1 %403  ;;  %v338_v6 = vadd.f32 %v337_v54, %v336_v41  ;;  %v326_v12 = vadd.f32 %v325_v61, %v324_v47 }
  0xb1   : > { %v281_v44 = vrot.slane %v280_v37, 2  ;;  %v465_v45 = vrot.slane %v402_v39, 4  ;;  %v471_v46 = vrot.slane %v404_v40, 4  ;;  %v341_v49 = vrot.slane %v340_v38, 2 }
  0xb2   : > { %v331_v55 = vrot.slane %v330_v42, 1  ;;  %v277_v7 = vrot.slane %v276_v56, 1  ;;  %v379_v22 = vmul.f32 0.0009765625, %v338_v6  ;;  %v377_v29 = vmul.f32 0.0009765625, %v326_v12 }
  0xb3   : > { %v282_v48 = vadd.f32 %v281_v44, %v280_v37  ;;  %v466_v57 = vmax.f32 %v402_v39, %v465_v45  ;;  %v472_v58 = vmax.f32 %v404_v40, %v471_v46  ;;  %v342_v63 = vadd.f32 %v341_v49, %v340_v38 }
  0xb4   : > { %v246_v50 = vpop.xlane.xlu0 %245  ;;  %v266_v51 = vpop.xlane.xlu1 %265  ;;  %v332_v8 = vadd.f32 %v331_v55, %v330_v42  ;;  %v278_v26 = vadd.f32 %v277_v7, %v276_v56 }
  0xb5   : > { %v285_v52 = vrot.slane %v246_v50, 4  ;;  %v345_v53 = vrot.slane %v266_v51, 4  ;;  %v283_v62 = vrot.slane %v282_v48, 1  ;;  %v467_v9 = vrot.slane %v466_v57, 2 }
  0xb6   : > { %v473_v10 = vrot.slane %v472_v58, 2  ;;  %v343_v13 = vrot.slane %v342_v63, 1  ;;  %v378_v25 = vmul.f32 0.0009765625, %v332_v8  ;;  %v369_v44 = vmul.f32 0.0009765625, %v278_v26 }
  0xb7   : > { %v286_v59 = vadd.f32 %v285_v52, %v246_v50  ;;  %v346_v60 = vadd.f32 %v345_v53, %v266_v51  ;;  %v284_v18 = vadd.f32 %v283_v62, %v282_v48  ;;  %v468_v27 = vmax.f32 %v466_v57, %v467_v9 }
  0xb8   : > { %v406_v0 = vpop.xlane.xlu0 %405  ;;  %v248_v1 = vpop.xlane.xlu1 %247  ;;  %v474_v28 = vmax.f32 %v472_v58, %v473_v10  ;;  %v344_v36 = vadd.f32 %v343_v13, %v342_v63  ;;  %v546_v43 = vsel %vm532_vm1, %v378_v25, %v377_v29 }
  0xb9   : > { %v287_v2 = vrot.slane %v286_v59, 2  ;;  %v347_v3 = vrot.slane %v346_v60, 2  ;;  %v477_v4 = vrot.slane %v406_v0, 4  ;;  %v291_v5 = vrot.slane %v248_v1, 4 }
  0xba   : > { %v370_v35 = vmul.f32 0.0009765625, %v284_v18  ;;  %v469_v45 = vrot.slane %v468_v27, 1  ;;  %v475_v46 = vrot.slane %v474_v28, 1  ;;  %v380_v53 = vmul.f32 0.0009765625, %v344_v36 }
  0xbb   : > { %v292_v11 = vadd.f32 %v291_v5, %v248_v1  ;;  %v478_v14 = vmax.f32 %v406_v0, %v477_v4  ;;  %v288_v19 = vadd.f32 %v287_v2, %v286_v59  ;;  %v348_v20 = vadd.f32 %v347_v3, %v346_v60 }
  0xbc   : > { %v268_v15 = vpop.xlane.xlu0 %267  ;;  %v386_v16 = vpop.xlane.xlu1 %385  ;;  %v533_v57 = vsel %vm532_vm1, %v370_v35, %v369_v44  ;;  %v470_v1 = vmax.f32 %v468_v27, %v469_v45  ;;  %v476_v2 = vmax.f32 %v474_v28, %v475_v46 }
  0xbd   : > { %v293_v21 = vrot.slane %v292_v11, 2  ;;  %v351_v23 = vrot.slane %v268_v15, 4  ;;  %v417_v24 = vrot.slane %v386_v16, 4  ;;  %v479_v30 = vrot.slane %v478_v14, 2 }
  0xbe   : > { %v289_v37 = vrot.slane %v288_v19, 1  ;;  %v349_v38 = vrot.slane %v348_v20, 1 }
  0xbf   : > { %v294_v31 = vadd.f32 %v293_v21, %v292_v11  ;;  %v352_v32 = vadd.f32 %v351_v23, %v268_v15  ;;  %v418_v40 = vmax.f32 %v386_v16, %v417_v24  ;;  %v480_v47 = vmax.f32 %v478_v14, %v479_v30 }
  0xc0   : > { %v388_v33 = vpop.xlane.xlu0 %387  ;;  %v408_v34 = vpop.xlane.xlu1 %407  ;;  %v290_v58 = vadd.f32 %v289_v37, %v288_v19  ;;  %v350_v59 = vadd.f32 %v349_v38, %v348_v20  ;;  %v547_v14 = vsel %vm534_vm2, %v379_v22, %v546_v43  ;;  %v653_v20 = vsel %vm532_vm1, %v476_v2, %v470_v1 }
  0xc1   : > { %v353_v39 = vrot.slane %v352_v32, 2  ;;  %v423_v41 = vrot.slane %v388_v33, 4  ;;  %v483_v42 = vrot.slane %v408_v34, 4  ;;  %v295_v48 = vrot.slane %v294_v31, 1 }
  0xc2   : > { %v419_v60 = vrot.slane %v418_v40, 2  ;;  %v481_v3 = vrot.slane %v480_v47, 1  ;;  %v371_v11 = vmul.f32 0.0009765625, %v290_v58  ;;  %v381_v12 = vmul.f32 0.0009765625, %v350_v59 }
  0xc3   : > { %v424_v49 = vmax.f32 %v388_v33, %v423_v41  ;;  %v484_v50 = vmax.f32 %v408_v34, %v483_v42  ;;  %v354_v54 = vadd.f32 %v353_v39, %v352_v32  ;;  %v296_v4 = vadd.f32 %v295_v48, %v294_v31 }
  0xc4   : > { %v250_v51 = vpop.xlane.xlu0 %249  ;;  %v270_v52 = vpop.xlane.xlu1 %269  ;;  %v420_v13 = vmax.f32 %v418_v40, %v419_v60  ;;  %v482_v21 = vmax.f32 %v480_v47, %v481_v3  ;;  %v548_v26 = vsel %vm536_vm3, %v380_v53, %v547_v14  ;;  %v535_v31 = vsel %vm534_vm2, %v371_v11, %v533_v57 }
  0xc5   : > { %v297_v55 = vrot.slane %v250_v51, 4  ;;  %v357_v56 = vrot.slane %v270_v52, 4  ;;  %v425_v61 = vrot.slane %v424_v49, 2  ;;  %v485_v62 = vrot.slane %v484_v50, 2 }
  0xc6   : > { %v355_v7 = vrot.slane %v354_v54, 1  ;;  %v372_v27 = vmul.f32 0.0009765625, %v296_v4  ;;  %v549_v33 = vsel %vm538_vm4, %v381_v12, %v548_v26  ;;  %v421_v34 = vrot.slane %v420_v13, 1 }
  0xc7   : > { %v298_v63 = vadd.f32 %v297_v55, %v250_v51  ;;  %v358_v0 = vadd.f32 %v357_v56, %v270_v52  ;;  %v426_v15 = vmax.f32 %v424_v49, %v425_v61  ;;  %v486_v16 = vmax.f32 %v484_v50, %v485_v62 }
  0xc8   : > { %v390_v5 = vpop.xlane.xlu0 %389  ;;  %v410_v6 = vpop.xlane.xlu1 %409  ;;  %v356_v28 = vadd.f32 %v355_v7, %v354_v54  ;;  %v654_v38 = vsel %vm534_vm2, %v482_v21, %v653_v20  ;;  %v1928_v47 = vsel %vm536_vm3, %v372_v27, %v535_v31  ;;  %v422_v52 = vmax.f32 %v420_v13, %v421_v34 }
  0xc9   : > { %v359_v8 = vrot.slane %v358_v0, 2  ;;  %v429_v9 = vrot.slane %v390_v5, 4  ;;  %v489_v10 = vrot.slane %v410_v6, 4  ;;  %v299_v18 = vrot.slane %v298_v63, 2 }
  0xca   : > { %v427_v35 = vrot.slane %v426_v15, 1  ;;  %v487_v36 = vrot.slane %v486_v16, 1  ;;  %v382_v44 = vmul.f32 0.0009765625, %v356_v28 }
  0xcb   : > { %v360_v19 = vadd.f32 %v359_v8, %v358_v0  ;;  %v430_v23 = vmax.f32 %v390_v5, %v429_v9  ;;  %v490_v30 = vmax.f32 %v410_v6, %v489_v10  ;;  %v300_v37 = vadd.f32 %v299_v18, %v298_v63 }
  0xcc   : > { %v252_v24 = vpop.xlane.xlu0 %251  ;;  %v272_v25 = vpop.xlane.xlu1 %271  ;;  %v428_v53 = vmax.f32 %v426_v15, %v427_v35  ;;  %v488_v54 = vmax.f32 %v486_v16, %v487_v36  ;;  %v550_v1 = vsel %vm540_vm5, %v382_v44, %v549_v33 }
  0xcd   : > { %v361_v29 = vrot.slane %v360_v19, 1  ;;  %v303_v32 = vrot.slane %v252_v24, 4  ;;  %v363_v22 = vrot.slane %v272_v25, 4  ;;  %v431_v39 = vrot.slane %v430_v23, 2 }
  0xce   : > { %v491_v46 = vrot.slane %v490_v30, 2  ;;  %v301_v55 = vrot.slane %v300_v37, 1  ;;  %v1932_v6 = vsel %vm532_vm1, %v428_v53, %v422_v52  ;;  %v1935_v9 = vsel %vm536_vm3, %v488_v54, %v654_v38 }
  0xcf   : > { %v304_v40 = vadd.f32 %v303_v32, %v252_v24  ;;  %v364_v41 = vadd.f32 %v363_v22, %v272_v25  ;;  %v362_v45 = vadd.f32 %v361_v29, %v360_v19  ;;  %v432_v56 = vmax.f32 %v430_v23, %v431_v39 }
  0xd0   : > { %v392_v42 = vpop.xlane.xlu0 %391  ;;  %v412_v43 = vpop.xlane.xlu1 %411  ;;  %v492_v3 = vmax.f32 %v490_v30, %v491_v46  ;;  %v302_v10 = vadd.f32 %v301_v55, %v300_v37 }
  0xd1   : > { %v305_v48 = vrot.slane %v304_v40, 2  ;;  %v365_v49 = vrot.slane %v364_v41, 2  ;;  %v435_v50 = vrot.slane %v392_v42, 4  ;;  %v495_v51 = vrot.slane %v412_v43, 4 }
  0xd2   : > { %v383_v2 = vmul.f32 0.0009765625, %v362_v45  ;;  %v433_v11 = vrot.slane %v432_v56, 1  ;;  %v493_v21 = vrot.slane %v492_v3, 1  ;;  %v373_v30 = vmul.f32 0.0009765625, %v302_v10 }
  0xd3   : > { %v366_v57 = vadd.f32 %v365_v49, %v364_v41  ;;  %v436_v58 = vmax.f32 %v392_v42, %v435_v50  ;;  %v496_v59 = vmax.f32 %v412_v43, %v495_v51  ;;  %v306_v62 = vadd.f32 %v305_v48, %v304_v40 }
  0xd4   : > { %v254_v60 = vpop.xlane.xlu0 %253  ;;  %v394_v61 = vpop.xlane.xlu1 %393  ;;  %v551_v25 = vsel %vm542_vm6, %v383_v2, %v550_v1  ;;  %v434_v31 = vmax.f32 %v432_v56, %v433_v11  ;;  %v494_v39 = vmax.f32 %v492_v3, %v493_v21  ;;  %v539_v53 = vsel %vm538_vm4, %v373_v30, %v1928_v47 }
  0xd5   : > { %v309_v63 = vrot.slane %v254_v60, 4  ;;  %v441_v0 = vrot.slane %v394_v61, 4  ;;  %v367_v4 = vrot.slane %v366_v57, 1  ;;  %v437_v5 = vrot.slane %v436_v58, 2 }
  0xd6   : > { %v497_v12 = vrot.slane %v496_v59, 2  ;;  %v307_v16 = vrot.slane %v306_v62, 1 }
  0xd7   : > { %v310_v7 = vadd.f32 %v309_v63, %v254_v60  ;;  %v442_v8 = vmax.f32 %v394_v61, %v441_v0  ;;  %v368_v15 = vadd.f32 %v367_v4, %v366_v57  ;;  %v438_v23 = vmax.f32 %v436_v58, %v437_v5 }
  0xd8   : > { %v414_v13 = vpop.xlane.xlu0 %413  ;;  %v256_v14 = vpop.xlane.xlu1 %255  ;;  %v498_v32 = vmax.f32 %v496_v59, %v497_v12  ;;  %v308_v35 = vadd.f32 %v307_v16, %v306_v62 }
  0xd9   : > { %v311_v18 = vrot.slane %v310_v7, 2  ;;  %v501_v19 = vrot.slane %v414_v13, 4  ;;  %v315_v20 = vrot.slane %v256_v14, 4  ;;  %v384_v24 = vmul.f32 0.0009765625, %v368_v15  ;;  %v513_v15 = vld [vmem:[%s2301_s1] sm:$0xf] }
  0xda   : > { %v443_v27 = vrot.slane %v442_v8, 2  ;;  %v439_v40 = vrot.slane %v438_v23, 1  ;;  %v499_v48 = vrot.slane %v498_v32, 1  ;;  %v374_v54 = vmul.f32 0.0009765625, %v308_v35  ;;  %v514_v35 = vld [vmem:[%s2302_s2] sm:$0xff] }
  0xdb   : > { %v312_v26 = vadd.f32 %v311_v18, %v310_v7  ;;  %v502_v28 = vmax.f32 %v414_v13, %v501_v19  ;;  %v316_v29 = vadd.f32 %v315_v20, %v256_v14  ;;  %v552_v33 = vsel %vm544_vm7, %v384_v24, %v551_v25 }
  0xdc   : > { %v396_v22 = vpop.xlane.xlu0 %395  ;;  %v416_v34 = vpop.xlane.xlu1 %415  ;;  %1572 = vmatpush3.msra.mxu0 %v552_v33  ;;  %v444_v44 = vmax.f32 %v442_v8, %v443_v27  ;;  %v440_v62 = vmax.f32 %v438_v23, %v439_v40  ;;  %v500_v2 = vmax.f32 %v498_v32, %v499_v48  ;;  %v541_v47 = vsel %vm540_vm5, %v374_v54, %v539_v53 }
  0xdd   : > { %v313_v36 = vrot.slane %v312_v26, 1  ;;  %v503_v37 = vrot.slane %v502_v28, 2  ;;  %v317_v38 = vrot.slane %v316_v29, 2  ;;  %v447_v41 = vrot.slane %v396_v22, 4  ;;  %1573 = vmatprep.subr.mxu0 %v1802_v17 }
  0xde   : > { %v507_v42 = vrot.slane %v416_v34, 4  ;;  %v445_v63 = vrot.slane %v444_v44, 1  ;;  %v656_v20 = vsel %vm538_vm4, %v494_v39, %v1935_v9  ;;  %v515_v39 = vld [vmem:[%s2302_s2 + $0x8] sm:$0xff] }
  0xdf   : > { %v314_v43 = vadd.f32 %v313_v36, %v312_v26  ;;  %v504_v45 = vmax.f32 %v502_v28, %v503_v37  ;;  %v318_v46 = vadd.f32 %v317_v38, %v316_v29  ;;  %v448_v49 = vmax.f32 %v396_v22, %v447_v41 }
  0xe0   : > { %v508_v50 = vmax.f32 %v416_v34, %v507_v42  ;;  %v398_v51 = vpop.xlane.xlu0 %397  ;;  %v400_v52 = vpop.xlane.xlu1 %399  ;;  %v446_v16 = vmax.f32 %v444_v44, %v445_v63  ;;  %v657_v25 = vsel %vm540_vm5, %v500_v2, %v656_v20  ;;  %v647_v26 = vsel %vm534_vm2, %v434_v31, %v1932_v6 }
  0xe1   : > { %v505_v55 = vrot.slane %v504_v45, 1  ;;  %v319_v56 = vrot.slane %v318_v46, 1  ;;  %v453_v57 = vrot.slane %v398_v51, 4  ;;  %v375_v58 = vmul.f32 0.0009765625, %v314_v43 }
  0xe2   : > { %v449_v59 = vrot.slane %v448_v49, 2  ;;  %v509_v60 = vrot.slane %v508_v50, 2  ;;  %v459_v61 = vrot.slane %v400_v52, 4  ;;  %v648_v29 = vsel %vm536_vm3, %v440_v62, %v647_v26 }
  0xe3   : > { %v320_v0 = vadd.f32 %v319_v56, %v318_v46  ;;  %v454_v1 = vmax.f32 %v398_v51, %v453_v57  ;;  %v506_v7 = vmax.f32 %v504_v45, %v505_v55  ;;  %v543_v14 = vsel %vm542_vm6, %v375_v58, %v541_v47 }
  0xe4   : > { %v450_v3 = vmax.f32 %v448_v49, %v449_v59  ;;  %v510_v4 = vmax.f32 %v508_v50, %v509_v60  ;;  %v460_v5 = vmax.f32 %v400_v52, %v459_v61  ;;  %v649_v22 = vsel %vm538_vm4, %v446_v16, %v648_v29 }
  0xe5   : > { %v455_v8 = vrot.slane %v454_v1, 2  ;;  %v376_v10 = vmul.f32 0.0009765625, %v320_v0  ;;  %v658_v28 = vsel %vm542_vm6, %v506_v7, %v657_v25  ;;  %v1804_v43 = vmov 0  }
  0xe6   : > { %v451_v11 = vrot.slane %v450_v3, 1  ;;  %v511_v12 = vrot.slane %v510_v4, 1  ;;  %v461_v13 = vrot.slane %v460_v5, 2  ;;  %1710 = vset.pattern.permute.xlu0 %v1804_v43  ;;  %1711 = vset.pattern.permute.xlu1 %v1804_v43  ;;  %v1805_v57 = vmov 1966171168  }
  0xe7   : > { %v456_v18 = vmax.f32 %v454_v1, %v455_v8  ;;  %v545_v19 = vsel %vm544_vm7, %v376_v10, %v543_v14  ;;  %v913_v58 = vunpack.c.l.s4 %v1805_v57  ;;  %v915_v59 = vlaneseq  ;;  %v1193_v57 = vld [vmem:[%s2303_s3 + $0x40] sm:$0xff] }
  0xe8   : > { %v452_v21 = vmax.f32 %v450_v3, %v451_v11  ;;  %v462_v23 = vmax.f32 %v460_v5, %v461_v13  ;;  %1574 = vmatpush3.msra.mxu0 %v545_v19  ;;  %v512_v24 = vmax.f32 %v510_v4, %v511_v12 }
  0xe9   : > { %v457_v27 = vrot.slane %v456_v18, 1  ;;  %1576 = vmatmul.mubr.msk.f32.vlgmr.msra.gmra.mxu0 %vm555_vm8, %v513_v15  ;;  %v914_v60 = vunpack.c.0.s8 %v913_v58  ;;  %v916_v61 = vshrl.u32 %v915_v59, 7  ;;  %v1507_v58 = vld [vmem:[%s2303_s3 + $0xb8] sm:$0xff] }
  0xea   : > { %v463_v30 = vrot.slane %v462_v23, 1  ;;  %v659_v32 = vsel %vm544_vm7, %v512_v24, %v658_v28  ;;  %v650_v34 = vsel %vm540_vm5, %v452_v21, %v649_v22  ;;  %1587 = vmatprep.mubr.msk.f32.mxu0 %vm733_vm9, %v514_v35  ;;  %v1192_v59 = vld [vmem:[%s2303_s3 + $0x38] sm:$0xff] }
  0xeb   : > { %v458_v9 = vmax.f32 %v456_v18, %v457_v27  ;;  %1579 = vmatpush3.msra.mxu1 %v659_v32  ;;  %v1979_v62 = vsub.s32 %v914_v60, %v916_v61  ;;  %v1988_v7 = vsub.s32 0, %v916_v61 }
  0xec   : > { %v464_v33 = vmax.f32 %v462_v23, %v463_v30  ;;  %1580 = vmatprep.subr.mxu1 %v1802_v17 }
  0xed   : > { %v651_v6 = vsel %vm542_vm6, %v458_v9, %v650_v34 }
  0xee   : > { %v652_v31 = vsel %vm544_vm7, %v464_v33, %v651_v6  ;;  %v1515_v6 = vld [vmem:[%s2303_s3 + $0xf8] sm:$0xff] }
  0xef   : > { %1581 = vmatpush3.msra.mxu1 %v652_v31  ;;  %v1200_v31 = vld [vmem:[%s2303_s3 + $0x78] sm:$0xff] }
  0xf0   : > { %1583 = vmatmul.mubr.msk.f32.vlgmr.msra.gmra.mxu1 %vm555_vm8, %v513_v15 }
  0xf1   : > { %1592 = vmatprep.mubr.msk.f32.mxu1 %vm733_vm9, %v514_v35  ;;  %v1514_v35 = vld [vmem:[%s2303_s3 + $0xf0] sm:$0xff] }
 0x1a9   : > { %v625_v36 = vpop.f32.mrf.mxu0 }
 0x1aa   : > { %v629_v37 = vmax.f32 %v625_v36, 0.0  ;;  %v1199_v36 = vld [vmem:[%s2303_s3 + $0x70] sm:$0xff] }
 0x1ab   : > { %v1577_v38 = vpop.f32.mrf.mxu0 }
 0x1ac   : > { %1590 = vmatprep.subr.msk.mxu1 %vm740_vm10, %v629_v37 }
 0x1ad   : > { %1591 = vmatpush3.msk.msra.mxu1 %vm740_vm10, %v629_v37 }
 0x1ae   : > { %1593 = vmatmul.mubr.msk.f32.vlgmr.msra.gmra.mxu1 %vm733_vm9, %v515_v39  ;;  %1630 = vmatprep.subr.mxu1 %v1802_v17 }
 0x1af   : > { %1662 = vmatprep.mubr.msk.f32.mxu1 %vm1803_vm0, %v1802_v17  ;;  %1631 = vmatpush3.msra.mxu1 %v1200_v31 }
 0x1b0   : > { %v728_v40 = vpop.f32.mrf.mxu1  ;;  %1632 = vmatprep.subr.mxu1 %v1802_v17 }
 0x1b1   : > { %v732_v41 = vmax.f32 %v728_v40, 0.0  ;;  %1633 = vmatpush3.msra.mxu1 %v1199_v36  ;;  %v1198_v40 = vld [vmem:[%s2303_s3 + $0x68] sm:$0xff] }
 0x1b2   : > { %v1584_v42 = vpop.f32.mrf.mxu1  ;;  %1634 = vmatprep.subr.mxu1 %v1802_v17 }
 0x1b3   : > { %1585 = vmatprep.subr.msk.mxu0 %vm740_vm10, %v732_v41  ;;  %v1197_v42 = vld [vmem:[%s2303_s3 + $0x60] sm:$0xff]  ;;  %1635 = vmatpush3.msra.mxu1 %v1198_v40 }
 0x1b4   : > { %1586 = vmatpush3.msk.msra.mxu0 %vm740_vm10, %v732_v41  ;;  %v1512_v41 = vld [vmem:[%s2303_s3 + $0xe0] sm:$0xff]  ;;  %1636 = vmatprep.subr.mxu1 %v1802_v17 }
 0x1b5   : > { %1588 = vmatmul.mubr.msk.f32.vlgmr.msra.gmra.mxu0 %vm733_vm9, %v515_v39  ;;  %1595 = vmatprep.subr.mxu0 %v1802_v17  ;;  %v1513_v39 = vld [vmem:[%s2303_s3 + $0xe8] sm:$0xff] }
 0x1b6   : > { %1627 = vmatprep.mubr.msk.f32.mxu0 %vm1803_vm0, %v1802_v17  ;;  %1596 = vmatpush3.msra.mxu0 %v1515_v6 }
 0x1b7   : > { %1597 = vmatprep.subr.mxu0 %v1802_v17  ;;  %1637 = vmatpush3.msra.mxu1 %v1197_v42  ;;  %v1731_v42 = vld [vmem:[%s1895_s10 + $0x38] sm:$0xff] }
 0x1b8   : > { %1598 = vmatpush3.msra.mxu0 %v1514_v35  ;;  %1638 = vmatprep.subr.mxu1 %v1802_v17  ;;  %v1729_v35 = vld [vmem:[%s1895_s10 + $0x28] sm:$0xff] }
 0x1b9   : > { %1599 = vmatprep.subr.mxu0 %v1802_v17 }
 0x1ba   : > { %1600 = vmatpush3.msra.mxu0 %v1513_v39 }
 0x1bb   : > { %1601 = vmatprep.subr.mxu0 %v1802_v17 }
 0x1bc   : > { %1602 = vmatpush3.msra.mxu0 %v1512_v41 }
 0x1bd   : > { %1603 = vmatprep.subr.mxu0 %v1802_v17 }
 0x26e   : > { %v1594_v44 = vpop.f32.mrf.mxu1 }
 0x270   : > { %v888_v49 = vpop.f32.mrf.mxu1 }
 0x275   : > { %v1589_v45 = vpop.f32.mrf.mxu0 }
 0x276   : > { %v894_v46 = vadd.f32 %v1594_v44, %v1589_v45  ;;  %v1511_v45 = vld [vmem:[%s2303_s3 + $0xd8] sm:$0xff] }
 0x277   : > { %v810_v48 = vpop.f32.mrf.mxu0  ;;  %1604 = vmatpush3.msra.mxu0 %v1511_v45 }
 0x278   : > { %v1499_v50 = vmul.f32 -1.442695, %v894_v46  ;;  %v889_v51 = vadd.f32 %v888_v49, %v810_v48  ;;  %v1196_v46 = vld [vmem:[%s2303_s3 + $0x58] sm:$0xff]  ;;  %v1510_v48 = vld [vmem:[%s2303_s3 + $0xd0] sm:$0xff]  ;;  %1605 = vmatprep.subr.mxu0 %v1802_v17 }
 0x279   : > { %1639 = vmatpush3.msra.mxu1 %v1196_v46  ;;  %1606 = vmatpush3.msra.mxu0 %v1510_v48  ;;  %v1732_v48 = vld [vmem:[%s1895_s10 + $0x40] sm:$0xff] }
 0x27a   : > { %1712 = vpow2.f32 %v1499_v50  ;;  %v1498_v52 = vmul.f32 -1.442695, %v889_v51  ;;  %v1195_v51 = vld [vmem:[%s2303_s3 + $0x50] sm:$0xff]  ;;  %1640 = vmatprep.subr.mxu1 %v1802_v17  ;;  %1607 = vmatprep.subr.mxu0 %v1802_v17 }
 0x27b   : > { %1641 = vmatpush3.msra.mxu1 %v1195_v51 }
 0x27c   : > { %1714 = vpow2.f32 %v1498_v52  ;;  %v1509_v52 = vld [vmem:[%s2303_s3 + $0xc8] sm:$0xff]  ;;  %1642 = vmatprep.subr.mxu1 %v1802_v17 }
 0x27d   : > { %1608 = vmatpush3.msra.mxu0 %v1509_v52 }
 0x27e   : > { %1609 = vmatprep.subr.mxu0 %v1802_v17 }
 0x287   : > { %v1713_v53 = vpop.eup %1712 }
 0x288   : > { %v904_v54 = vadd.f32 1.0, %v1713_v53  ;;  %v1194_v53 = vld [vmem:[%s2303_s3 + $0x48] sm:$0xff] }
 0x289   : > { %v1715_v55 = vpop.eup %1714  ;;  %1643 = vmatpush3.msra.mxu1 %v1194_v53 }
 0x28a   : > { %1716 = vrcp.f32 %v904_v54  ;;  %v903_v56 = vadd.f32 1.0, %v1715_v55  ;;  %1644 = vmatprep.subr.mxu1 %v1802_v17 }
 0x28b   : > { %1645 = vmatpush3.msra.mxu1 %v1193_v57 }
 0x28c   : > { %1718 = vrcp.f32 %v903_v56  ;;  %v1508_v56 = vld [vmem:[%s2303_s3 + $0xc0] sm:$0xff]  ;;  %1646 = vmatprep.subr.mxu1 %v1802_v17 }
 0x28d   : > { %1610 = vmatpush3.msra.mxu0 %v1508_v56  ;;  %1647 = vmatpush3.msra.mxu1 %v1192_v59  ;;  %v1734_v56 = vld [vmem:[%s1895_s10 + $0x50] sm:$0xff]  ;;  %v1735_v59 = vld [vmem:[%s1895_s10 + $0x58] sm:$0xff] }
 0x28e   : > { %1611 = vmatprep.subr.mxu0 %v1802_v17  ;;  %1648 = vmatprep.subr.mxu1 %v1802_v17 }
 0x28f   : > { %1612 = vmatpush3.msra.mxu0 %v1507_v58 }
 0x290   : > { %1613 = vmatprep.subr.mxu0 %v1802_v17 }
 0x297   : > { %v1717_v63 = vpop.eup %1716 }
 0x298   : > { %v1982_v0 = vrot.slane %v1717_v63, %v1979_v62  ;;  %v960_v4 = vcombine.high %v1717_v63, %v1717_v63  ;;  %v1191_v63 = vld [vmem:[%s2303_s3 + $0x30] sm:$0xff] }
 0x299   : > { %v1719_v1 = vpop.eup %1718  ;;  %1649 = vmatpush3.msra.mxu1 %v1191_v63 }
 0x29a   : > { %v918_v2 = vrot.slane %v1719_v1, %v1979_v62  ;;  %v975_v3 = vcombine.high %v1982_v0, %v1982_v0  ;;  %v911_v10 = vcombine.high %v1719_v1, %v1719_v1  ;;  %v1994_v13 = vrot.slane %v960_v4, %v1979_v62  ;;  %v1190_v1 = vld [vmem:[%s2303_s3 + $0x28] sm:$0xff]  ;;  %1650 = vmatprep.subr.mxu1 %v1802_v17  ;;  %v1189_v4 = vld [vmem:[%s2303_s3 + $0x20] sm:$0xff] }
 0x29b   : > { %v983_v44 = vrot.slane %v1982_v0, %v1979_v62  ;;  %v1505_v0 = vld [vmem:[%s2303_s3 + $0xa8] sm:$0xff]  ;;  %1651 = vmatpush3.msra.mxu1 %v1190_v1 }
 0x29c   : > { %v934_v5 = vrot.slane %v918_v2, %v1979_v62  ;;  %v926_v8 = vcombine.high %v918_v2, %v918_v2  ;;  %v997_v12 = vrot.slane %v975_v3, %v1979_v62  ;;  %v925_v16 = vrot.slane %v911_v10, %v1979_v62  ;;  %v1504_v3 = vld [vmem:[%s2303_s3 + $0xa0] sm:$0xff]  ;;  %1652 = vmatprep.subr.mxu1 %v1802_v17  ;;  %v1502_v10 = vld [vmem:[%s2303_s3 + $0x90] sm:$0xff] }
 0x29d   : > { %v976_v20 = vcombine.high %v1994_v13, %v1994_v13  ;;  %v1044_v49 = vrot.slane %v983_v44, %v1988_v7  ;;  %v1005_v50 = vcombine.high %v983_v44, %v983_v44  ;;  %v990_v55 = vrot.slane %v1994_v13, %v1979_v62  ;;  %1653 = vmatpush3.msra.mxu1 %v1189_v4  ;;  %v1500_v13 = vld [vmem:[%s2303_s3 + $0x80] sm:$0xff] }
 0x29e   : > { %v1012_v47 = vrot.slane %v934_v5, %v1988_v7  ;;  %v948_v11 = vrot.slane %v926_v8, %v1979_v62  ;;  %v956_v15 = vcombine.high %v934_v5, %v934_v5  ;;  %v1048_v18 = vrot.slane %v997_v12, %v1988_v7  ;;  %v1516_v5 = vld [vmem:[#allocation2] ss:$0 sm:$0xff]  ;;  %v1188_v8 = vld [vmem:[%s2303_s3 + $0x18] sm:$0xff]  ;;  %1654 = vmatprep.subr.mxu1 %v1802_v17 }
 0x29f   : > { %v1007_v19 = vcombine.high %v997_v12, %v997_v12  ;;  %v941_v23 = vrot.slane %v925_v16, %v1979_v62  ;;  %v1004_v25 = vrot.slane %v976_v20, %v1979_v62  ;;  %v927_v28 = vcombine.high %v925_v16, %v925_v16  ;;  %1655 = vmatpush3.msra.mxu1 %v1188_v8  ;;  %v1186_v12 = vld [vmem:[%s2303_s3 + $0x8] sm:$0xff] }
 0x2a0   : > { %1074 = vperm.xlu0 %1710, %v1012_v47   ;;  %v1016_v14 = vrot.slane %v948_v11, %v1988_v7  ;;  %v1020_v21 = vrot.slane %v956_v15, %v1988_v7  ;;  %v958_v27 = vcombine.high %v948_v11, %v948_v11  ;;  %v1052_v54 = vrot.slane %v1005_v50, %v1988_v7  ;;  %v1187_v47 = vld [vmem:[%s2303_s3 + $0x10] sm:$0xff]  ;;  %v1501_v11 = vld [vmem:[%s2303_s3 + $0x88] sm:$0xff] }
 0x2a1   : > { %v1056_v24 = vrot.slane %v1007_v19, %v1988_v7  ;;  %v1028_v26 = vrot.slane %v941_v23, %v1988_v7  ;;  %v1064_v29 = vrot.slane %v1004_v25, %v1988_v7  ;;  %v1008_v30 = vcombine.high %v1004_v25, %v1004_v25  ;;  %1656 = vmatprep.subr.mxu1 %v1802_v17  ;;  %v1724_v20 = vld [vmem:[%s1895_s10 + $0x8] sm:$0xff]  ;;  %v1726_v25 = vld [vmem:[%s1895_s10 + $0x10] sm:$0xff] }
 0x2a2   : > { %1078 = vperm.xlu1 %1711, %v1016_v14   ;;  %v1024_v32 = vrot.slane %v958_v27, %v1988_v7  ;;  %v955_v9 = vrot.slane %v927_v28, %v1979_v62  ;;  %v957_v34 = vcombine.high %v941_v23, %v941_v23  ;;  %v1060_v60 = vrot.slane %v990_v55, %v1988_v7  ;;  %v1506_v62 = vld [vmem:[%s2303_s3 + $0xb0] sm:$0xff]  ;;  %v1185_v14 = vld [vmem:[%s2303_s3] sm:$0xff]  ;;  %v1727_v28 = vld [vmem:[%s1895_s10 + $0x18] sm:$0xff] }
 0x2a3   : > { %v1072_v22 = vrot.slane %v1008_v30, %v1988_v7  ;;  %v1006_v61 = vcombine.high %v990_v55, %v990_v55  ;;  %1614 = vmatpush3.msra.mxu0 %v1506_v62  ;;  %1657 = vmatpush3.msra.mxu1 %v1187_v47  ;;  %v1725_v23 = vld [vmem:[%s1895_s10] sm:$0xff]  ;;  %v1733_v50 = vld [vmem:[%s1895_s10 + $0x48] sm:$0xff] }
 0x2a4   : > { %1110 = vperm.xlu0 %1710, %v1048_v18   ;;  %v1032_v33 = vrot.slane %v955_v9, %v1988_v7  ;;  %v1036_v37 = vrot.slane %v957_v34, %v1988_v7  ;;  %v959_v38 = vcombine.high %v955_v9, %v955_v9  ;;  %1615 = vmatprep.subr.mxu0 %v1802_v17 }
 0x2a5   : > { %v1068_v2 = vrot.slane %v1006_v61, %v1988_v7  ;;  %1616 = vmatpush3.msra.mxu0 %v1505_v0  ;;  %1658 = vmatprep.subr.mxu1 %v1802_v17 }
 0x2a6   : > { %1082 = vperm.xlu1 %1711, %v1020_v21   ;;  %v1040_v43 = vrot.slane %v959_v38, %v1988_v7  ;;  %1617 = vmatprep.subr.mxu0 %v1802_v17  ;;  %v1503_v7 = vld [vmem:[%s2303_s3 + $0x98] sm:$0xff] }
 0x2a7   : > { %1618 = vmatpush3.msra.mxu0 %v1504_v3  ;;  %1659 = vmatpush3.msra.mxu1 %v1186_v12  ;;  %v1736_v3 = vld [vmem:[%s1895_s10 + $0x60] sm:$0xff] }
 0x2a8   : > { %1118 = vperm.xlu0 %1710, %v1056_v24   ;;  %1619 = vmatprep.subr.mxu0 %v1802_v17 }
 0x2a9   : > { %1620 = vmatpush3.msra.mxu0 %v1503_v7  ;;  %1660 = vmatprep.subr.mxu1 %v1802_v17 }
 0x2aa   : > { %1090 = vperm.xlu1 %1711, %v1028_v26   ;;  %1621 = vmatprep.subr.mxu0 %v1802_v17 }
 0x2ab   : > { %1622 = vmatpush3.msra.mxu0 %v1502_v10  ;;  %1661 = vmatpush3.msra.mxu1 %v1185_v14 }
 0x2ac   : > { %1126 = vperm.xlu0 %1710, %v1064_v29   ;;  %1623 = vmatprep.subr.mxu0 %v1802_v17 }
 0x2ad   : > { %1624 = vmatpush3.msra.mxu0 %v1501_v11 }
 0x2ae   : > { %1086 = vperm.xlu1 %1711, %v1024_v32   ;;  %1625 = vmatprep.subr.mxu0 %v1802_v17 }
 0x2af   : > { %1626 = vmatpush3.msra.mxu0 %v1500_v13  ;;  %v1738_v13 = vld [vmem:[%s1895_s10 + $0x78] sm:$0xff] }
 0x2b0   : > { %1134 = vperm.xlu0 %1710, %v1072_v22  }
 0x2b2   : > { %1094 = vperm.xlu1 %1711, %v1032_v33   ;;  %v1728_v33 = vld [vmem:[%s1895_s10 + $0x20] sm:$0xff] }
 0x2b6   : > { %1098 = vperm.xlu1 %1711, %v1036_v37   ;;  %v1730_v37 = vld [vmem:[%s1895_s10 + $0x30] sm:$0xff] }
 0x2ba   : > { %1102 = vperm.xlu1 %1711, %v1040_v43  }
 0x2be   : > { %1106 = vperm.xlu1 %1711, %v1044_v49  }
 0x2c2   : > { %1114 = vperm.xlu1 %1711, %v1052_v54  }
 0x2c6   : > { %1122 = vperm.xlu1 %1711, %v1060_v60  }
 0x2ca   : > { %1130 = vperm.xlu1 %1711, %v1068_v2  }
 0x2ce   : > { %1365 = vperm.xlu1 %1711, %v1516_v5   ;;  %v1737_v5 = vld [vmem:[%s1895_s10 + $0x68] sm:$0xff] }
 0x31b   : > { %v1075_v18 = vpop.permute.xlu0 %1074 }
 0x31c   : > { %v2151_v24 = vmul.f32 %v1725_v23, %v1075_v18 }
 0x31d   : > { %v1079_v15 = vpop.permute.xlu1 %1078 }
 0x31e   : > { %v2148_v21 = vmul.f32 %v1724_v20, %v1079_v15  ;;  %v1739_v20 = vld [vmem:[%s1895_s10 + $0x70] sm:$0xff]  ;;  %s217_s10 = sand.u32 1, %s1792_s21  }
 0x31f   : > { %v1111_v22 = vpop.permute.xlu0 %1110  ;;  %s1487_s17 = sshll.u32 %s217_s10, 7  ;;  %s2260_s6 = scalar_lea.sflag [#allocation4], %s217_s10 }
 0x320   : > { %v1153_v17 = vadd.f32 %v2148_v21, %v2151_v24  ;;  %v2183_v51 = vmul.f32 %v1733_v50, %v1111_v22  ;;  %s2219_s19 = scalar_lea.vmem [#allocation3], %s1487_s17 }
 0x321   : > { %v1083_v16 = vpop.permute.xlu1 %1082  ;;  %s1421_s24 = sshll.u32 %s2219_s19, 4  ;;  %s2243_s24 = int_to_ptr.vmem [resolvable:$true] %s1421_s24 }
 0x322   : > { %v2154_v26 = vmul.f32 %v1726_v25, %v1083_v16  ;;  %s1740_s7 = scalar_lea.vmem %s2243_s24, 2048  ;;  %p1747_p0 = scmp.lt.s32.totalorder %s2243_s24, %s1745_s9 }
 0x323   : > { %v1119_v40 = vpop.permute.xlu0 %1118  ;;  %p1741_p11 = scmp.ne.s32.totalorder %s2243_s24, %s1740_s7  ;;  %p1748_p1 = scmp.lt.s32.totalorder %s1746_s11, %s1740_s7 }
 0x324   : > { %v1154_v30 = vadd.f32 %v1153_v17, %v2154_v26  ;;  %v2193_v60 = vmul.f32 %v1735_v59, %v1119_v40 }
 0x325   : > { %v1091_v19 = vpop.permute.xlu1 %1090  ;;  %p1742_p12 = pnand %p1741_p11, %p1880_p5  ;;  %p1749_p2 = por %p1748_p1, %p1747_p0 }
 0x326   : > { %v2164_v34 = vmul.f32 %v1728_v33, %v1091_v19 }
 0x327   : > { %v1127_v52 = vpop.permute.xlu0 %1126  ;;  %p1743_p13 = pneg %p1742_p12 }
 0x328   : > { %v1170_v0 = vmax.f32 %v2151_v24, %v2164_v34  ;;  %v1150_v7 = vmul.f32 %v1737_v5, %v1127_v52 }
 0x329   : > { %v1087_v27 = vpop.permute.xlu1 %1086  ;;  %p1750_p3 = pnand %p1749_p2, %p1743_p13 }
 0x32a   : > { %v2159_v29 = vmul.f32 %v1727_v28, %v1087_v27 }
 0x32b   : > { %v1135_v1 = vpop.permute.xlu0 %1134 }
 0x32c   : > { %v1155_v9 = vadd.f32 %v1154_v30, %v2159_v29  ;;  %v1152_v14 = vmul.f32 %v1738_v13, %v1135_v1 }
 0x32d   : > { %v1095_v32 = vpop.permute.xlu1 %1094 }
 0x32e   : > { %v1156_v31 = vadd.f32 %v1155_v9, %v2164_v34  ;;  %v2168_v36 = vmul.f32 %v1729_v35, %v1095_v32 }
 0x330   : > { %v1157_v41 = vadd.f32 %v1156_v31, %v2168_v36  ;;  %v1171_v58 = vmax.f32 %v2148_v21, %v2168_v36 }
 0x331   : > { %v1099_v6 = vpop.permute.xlu1 %1098 }
 0x332   : > { %v2171_v38 = vmul.f32 %v1730_v37, %v1099_v6  ;;  %v1175_v8 = vmax.f32 %v1171_v58, %v2183_v51 }
 0x334   : > { %v1158_v44 = vadd.f32 %v1157_v41, %v2171_v38  ;;  %v1172_v10 = vmax.f32 %v2154_v26, %v2171_v38  ;;  %v1179_v25 = vmax.f32 %v1175_v8, %v1150_v7 }
 0x335   : > { %v1103_v39 = vpop.permute.xlu1 %1102 }
 0x336   : > { %v2175_v43 = vmul.f32 %v1731_v42, %v1103_v39 }
 0x338   : > { %v1159_v46 = vadd.f32 %v1158_v44, %v2175_v43  ;;  %v1173_v61 = vmax.f32 %v2159_v29, %v2175_v43 }
 0x339   : > { %v1107_v45 = vpop.permute.xlu1 %1106 }
 0x33a   : > { %v2180_v49 = vmul.f32 %v1732_v48, %v1107_v45  ;;  %v1177_v47 = vmax.f32 %v1173_v61, %v2193_v60 }
 0x33c   : > { %v1160_v53 = vadd.f32 %v1159_v46, %v2180_v49  ;;  %v1174_v11 = vmax.f32 %v1170_v0, %v2180_v49  ;;  %v1181_v27 = vmax.f32 %v1177_v47, %v1152_v14 }
 0x33d   : > { %v1115_v54 = vpop.permute.xlu1 %1114 }
 0x33e   : > { %v1161_v55 = vadd.f32 %v1160_v53, %v2183_v51  ;;  %v2188_v57 = vmul.f32 %v1734_v56, %v1115_v54 }
 0x340   : > { %v1162_v62 = vadd.f32 %v1161_v55, %v2188_v57  ;;  %v1176_v16 = vmax.f32 %v1172_v10, %v2188_v57 }
 0x341   : > { %v1123_v63 = vpop.permute.xlu1 %1122 }
 0x342   : > { %v1163_v2 = vadd.f32 %v1162_v62, %v2193_v60  ;;  %v2202_v4 = vmul.f32 %v1736_v3, %v1123_v63 }
 0x344   : > { %v1164_v12 = vadd.f32 %v1163_v2, %v2202_v4  ;;  %v1178_v18 = vmax.f32 %v1174_v11, %v2202_v4 }
 0x345   : > { %v1131_v15 = vpop.permute.xlu1 %1130 }
 0x346   : > { %v1165_v19 = vadd.f32 %v1164_v12, %v1150_v7  ;;  %v1151_v23 = vmul.f32 %v1739_v20, %v1131_v15  ;;  %v1182_v30 = vmax.f32 %v1178_v18, %v1179_v25 }
 0x348   : > { %v1166_v17 = vadd.f32 %v1165_v19, %v1151_v23  ;;  %v1180_v28 = vmax.f32 %v1176_v16, %v1151_v23 }
 0x349   : > { %v1366_v35 = vpop.permute.xlu1 %1365 }
 0x34a   : > { %v1167_v32 = vadd.f32 %v1166_v17, %v1152_v14  ;;  %v1183_v9 = vmax.f32 %v1180_v28, %v1181_v27 }
 0x34c   : > { %v1184_v22 = vmax.f32 %v1182_v30, %v1183_v9  ;;  %v1169_v33 = vmul.f32 0.0625, %v1167_v32 }
 0x34e   : > { %1628 = vmatmul.mubr.f32.vlgmr.msra.gmra.mxu0 %v1184_v22  ;;  %1663 = vmatmul.mubr.f32.vlgmr.msra.gmra.mxu1 %v1169_v33 }
 0x40e   : > { %v1284_v6 = vpop.f32.mrf.mxu0  ;;  %v1354_v31 = vpop.f32.mrf.mxu1 }
 0x40f   : > { %v1355_v37 = vadd.f32 %v1354_v31, %v1284_v6 }
 0x410   : > { %v1629_v39 = vpop.f32.mrf.mxu0  ;;  %v1664_v40 = vpop.f32.mrf.mxu1 }
 0x411   : > { %v1368_v41 = vadd.f32 %v1366_v35, %v1355_v37 }
 0x413   : > { %v1517_v42 = vmul.f32 -1.442695, %v1368_v41 }
 0x415   : > { %1720 = vpow2.f32 %v1517_v42 }
 0x422   : > { %v1721_v44 = vpop.eup %1720 }
 0x423   : > { %v1372_v45 = vadd.f32 1.0, %v1721_v44 }
 0x425   : > { %1722 = vrcp.f32 %v1372_v45 }
 0x432   : > { %v1723_v46 = vpop.eup %1722 }
 0x433   : > { %v1375_v48 = vmul.f32 %v1723_v46, %v2151_v24  ;;  %v1376_v50 = vmul.f32 %v1723_v46, %v2148_v21  ;;  %v1377_v52 = vmul.f32 %v1723_v46, %v2154_v26  ;;  %v1378_v53 = vmul.f32 %v1723_v46, %v2159_v29 }
 0x434   : > { %v1379_v54 = vmul.f32 %v1723_v46, %v2164_v34  ;;  %v1380_v55 = vmul.f32 %v1723_v46, %v2168_v36  ;;  %v1381_v56 = vmul.f32 %v1723_v46, %v2171_v38  ;;  %v1382_v58 = vmul.f32 %v1723_v46, %v2175_v43 }
 0x435   : > { %v1383_v59 = vmul.f32 %v1723_v46, %v2180_v49  ;;  %v1384_v24 = vmul.f32 %v1723_v46, %v2183_v51  ;;  %v1385_v21 = vmul.f32 %v1723_v46, %v2188_v57  ;;  %v1386_v26 = vmul.f32 %v1723_v46, %v2193_v60  ;;  %1391 = vst [vmem:[%s2219_s19] sm:$0xff] %v1375_v48 }
 0x436   : > { %1392 = vst [vmem:[%s2219_s19 + $0x8] sm:$0xff] %v1376_v50  ;;  %1393 = vst [vmem:[%s2219_s19 + $0x10] sm:$0xff] %v1377_v52  ;;  %v1387_v29 = vmul.f32 %v1723_v46, %v2202_v4  ;;  %v1388_v34 = vmul.f32 %v1723_v46, %v1150_v7  ;;  %v1389_v36 = vmul.f32 %v1723_v46, %v1151_v23 }
 0x437   : > { %1394 = vst [vmem:[%s2219_s19 + $0x18] sm:$0xff] %v1378_v53  ;;  %v1390_v38 = vmul.f32 %v1723_v46, %v1152_v14  ;;  %1395 = vst [vmem:[%s2219_s19 + $0x20] sm:$0xff] %v1379_v54 }
 0x438   : > { %1396 = vst [vmem:[%s2219_s19 + $0x28] sm:$0xff] %v1380_v55  ;;  %1397 = vst [vmem:[%s2219_s19 + $0x30] sm:$0xff] %v1381_v56 }
 0x439   : > { %1398 = vst [vmem:[%s2219_s19 + $0x38] sm:$0xff] %v1382_v58  ;;  %1399 = vst [vmem:[%s2219_s19 + $0x40] sm:$0xff] %v1383_v59 }
 0x43a   : > { %1400 = vst [vmem:[%s2219_s19 + $0x48] sm:$0xff] %v1384_v24  ;;  %1401 = vst [vmem:[%s2219_s19 + $0x50] sm:$0xff] %v1385_v21 }
 0x43b   : > { %1402 = vst [vmem:[%s2219_s19 + $0x58] sm:$0xff] %v1386_v26  ;;  %1403 = vst [vmem:[%s2219_s19 + $0x60] sm:$0xff] %v1387_v29 }
 0x43c   : > { %1404 = vst [vmem:[%s2219_s19 + $0x68] sm:$0xff] %v1388_v34  ;;  %1405 = vst [vmem:[%s2219_s19 + $0x70] sm:$0xff] %v1389_v36 }
 0x43d   : > { %1406 = vst [vmem:[%s2219_s19 + $0x78] sm:$0xff] %v1390_v38 }
 0x43e   : > { %1753 = shalt.err (!%p1750_p3)
}
 0x43f   : > { %s1754_s12 = scalar_lea.hbm %s2241_s27, 2048  ;;  %s1758_s15 = scalar_lea.hbm %s2305_s5, 4096 }
 0x440   : > { %p1755_p4 = scmp.ne.s32.totalorder %s2241_s27, %s1754_s12  ;;  %p1759_p9 = scmp.lt.s32.totalorder %s2241_s27, %s2305_s5 }
 0x441   : > { %p1760_p10 = scmp.lt.s32.totalorder %s1758_s15, %s1754_s12 }
 0x442   : > { %p1756_p7 = pnand %p1755_p4, %p1880_p5 }
 0x443   : > { %p1761_p11 = por %p1760_p10, %p1759_p9 }
 0x444   : > { %p1757_p8 = pneg %p1756_p7 }
 0x446   : > { %p1762_p12 = pnand %p1761_p11, %p1757_p8 }
 0x448   : > { %1765 = shalt.err (!%p1762_p12)
}
 0x449   : > { %s1807_s17 = smov 128   ;;  %s1808_s18 = smov 8  }
 0x44a   : > { %1665 = dma.vmem_to_hbm [thread:$0]  (%p1880_p5), %s2243_s24, 2048, %s2241_s27, %s2260_s6, %s1807_s17, %s1807_s17, %s1808_s18  }
 0x44b PF: > { %p1671_p13 = scmp.ge.s32.totalorder %s1800_s23, 2  ;;  %s1436_s19 = sand.u32 1, %s1788_s20  }
 0x44c   : > { %s1437_s4 = scalar_lea.sflag [#allocation4], %s1436_s19 }
 0x44d   : > { %p1668_p0 = pnand %p1671_p13, %p1884_p6 }
 0x44f   : > { %p1669_p1 = pneg %p1668_p0 }
 0x451   : > { %1783 = dma.done.wait (%p1669_p1), %s1437_s4, 2048  }
 0x452   : > { %1785 = vsyncadd (%p1669_p1), %s1437_s4, 4294965248  ;;  %p17_p2 = scmp.ge.s32.totalorder %s1867_s25, 4   ;;  %s2308_s20 = smov %s1792_s21 }
 0x453   : > { %s2309_s21 = smov %s1796_s22  ;;  %s2310_s22 = smov %s1878_s28 }
 0x454   : > { %s2311_s23 = smov %s1867_s25  ;;  %19 = sbr.rel (!%p17_p2) target bundleno = 6 (0x6), region = 76 }
 0x459   :  { %1442 = vsyncpa [#allocation4], 1 }
 0x45a   :  { %1444 = vsyncpa [#allocation4 + $0x1], 1 }

</bundles_post_ra>
